<compile_context>
chip_gen: v6e
topology: v6e:2x2x1
jax: 0.10.0
libtpu: 0.0.40
codegen_flags: <defaults>
</compile_context>

<pallas_src>
import numpy as np
import jax
import jax.numpy as jnp
from jax import lax
from jax.experimental import pallas as pl
from jax.experimental.pallas import tpu as pltpu

# -----------------------------------------------------------------------------
# Config (the `opt` object of the PyTorch module, small deterministic sizes).
# -----------------------------------------------------------------------------
VOCAB_SIZE = 100
VOCAB_PAD = 128                      # vocab padded to a full lane width
EMBEDDING_DIM = 32
TITLE_DIM = 16
SENT_LEN = 16
SIN_KER_SIZE = (1, 2)
DOU_KER_SIZE = ((1, 2), (2, 3))
NUM_ID_FEATURE_MAP = 16
NUM_CLASSES = 8
BATCH_SIZE = 2
BN_EPS = 1e-5

NUM_SEQ0 = len(SIN_KER_SIZE) + len(DOU_KER_SIZE)     # length after torch.cat(dim=2) = 4
RES_LENS = []
_n = NUM_SEQ0
while _n > 2:                                        # same loop as the torch __init__
    RES_LENS.append(_n)
    _n //= 2
NUM_RES_BLOCKS = len(RES_LENS)                       # 1
FINAL_SEQ = _n                                       # 2

N_TOK = BATCH_SIZE * SENT_LEN                        # 32 stacked token rows
NQ_ROWS = N_TOK + 8                                  # + zero-embedding sentinel rows
NH_ROWS = N_TOK + 2                                  # fused first-conv rows (2nd conv taps)
NB_HEAD = NUM_SEQ0 * TITLE_DIM                       # 64 fused first-conv output channels
NB_DOU = len(DOU_KER_SIZE) * TITLE_DIM               # 32 fused second-conv output channels
N_SIN = len(SIN_KER_SIZE) * TITLE_DIM                # 32 single-branch channels
MASK_NEG = -1.0e30


# -----------------------------------------------------------------------------
# Kernel: whole forward pass, single grid point, everything resident in VMEM.
# -----------------------------------------------------------------------------
def _textcnn_kernel(*refs):
    out_ref = refs[-1]
    it = iter(refs[:-1])
    ids_ref = next(it)                   # (NQ_ROWS, 1) int32
    emb_ref = next(it)                   # (VOCAB_PAD, E)        bf16
    w1_ref = next(it)                    # (2, E, NB_HEAD)       bf16  fused head conv-1
    b1_ref = next(it)                    # (1, NB_HEAD)          f32
    w2_ref = next(it)                    # (3, NB_HEAD, NB_DOU)  bf16  fused head conv-2
    b2_ref = next(it)                    # (1, NB_DOU)           f32
    mb1_ref = next(it)                   # (S, NB_HEAD)  additive 0/-1e30 pool mask
    mb2_ref = next(it)                   # (S, NB_DOU)
    mc_ref, bc_ref = next(it), next(it)          # change_dim_conv as block-diag matmul
    s1_ref, t1_ref = next(it), next(it)          # self.conv leading BN (affine)
    wa_ref, ba_ref = next(it), next(it)          # self.conv conv-a (+BN folded), banded
    wb_ref, bb_ref = next(it), next(it)          # self.conv conv-b, banded
    res_p = [tuple(next(it) for _ in range(6)) for _ in range(NUM_RES_BLOCKS)]
    k1_ref, bk1_ref = next(it), next(it)         # fc1 (+BN folded), pos-major re-indexed
    k2_ref, bk2_ref = next(it), next(it)         # fc2

    f32 = jnp.float32
    bf16 = jnp.bfloat16

    def mm(a, w):                        # MXU: bf16 operands, f32 accumulation
        return jnp.dot(a.astype(bf16), w, preferred_element_type=f32)

    # ---- embedding: one lane-aligned one-hot compare + ONE matmul for all B*S tokens ----
    ids = ids_ref[...]                                           # (NQ, 1)
    iota_v = lax.broadcasted_iota(jnp.int32, (NQ_ROWS, VOCAB_PAD), 1)
    onehot = (ids == iota_v).astype(f32)                         # (NQ, 128)
    q = mm(onehot, emb_ref[...])                                 # (NQ, E) f32; pad rows -> 0

    # ---- all 4 head branches' first convs fused: one 2-tap conv, 64 output channels ----
    # taps are shifted slices of q (zero pad rows already built into q).
    h1 = mm(q[0:NH_ROWS, :], w1_ref[0]) + mm(q[1:NH_ROWS + 1, :], w1_ref[1])
    h1 = jnp.maximum(h1 + b1_ref[...], 0.0)                      # (N+2, 64) f32, BN folded

    # ---- both double-branch second convs fused: one 3-tap conv, 32 output channels ----
    h2 = (mm(h1[0:N_TOK, :], w2_ref[0])
          + mm(h1[1:N_TOK + 1, :], w2_ref[1])
          + mm(h1[2:N_TOK + 2, :], w2_ref[2]))
    h2 = jnp.maximum(h2 + b2_ref[...], 0.0)                      # (N, 32) f32

    # ---- per-batch global max pools (additive -1e30 masks kill invalid positions) ----
    mb1 = mb1_ref[...]
    mb2 = mb2_ref[...]
    rows = []
    for b in range(BATCH_SIZE):                                  # B=2, reductions only
        lo = b * SENT_LEN
        f1 = jnp.max(h1[lo:lo + SENT_LEN, :] + mb1, axis=0, keepdims=True)   # (1, 64)
        f2 = jnp.max(h2[lo:lo + SENT_LEN, :] + mb2, axis=0, keepdims=True)   # (1, 32)
        rows.append(jnp.concatenate([f1[:, :N_SIN], f2], axis=1))            # (1, 64)
    x = jnp.concatenate(rows, axis=0)        # (B, NUM_SEQ0*TITLE_DIM), lane = pos*C + ch

    # ---- tail in lane space: every Conv1d is a single banded matmul built host-side ----
    xp = mm(x, mc_ref[...]) + bc_ref[...]                        # change_dim_conv (k=1)
    y = jnp.maximum(x * s1_ref[...] + t1_ref[...], 0.0)          # BN -> ReLU
    y = jnp.maximum(mm(y, wa_ref[...]) + ba_ref[...], 0.0)       # Conv3(pad1)+BN -> ReLU
    y = mm(y, wb_ref[...]) + bb_ref[...]                         # Conv3(pad1)
    x = y + xp                                                   # (B, L0*NF)

    C = NUM_ID_FEATURE_MAP
    L = NUM_SEQ0
    for (rs_ref, rt_ref, r1_ref, br1_ref, r2_ref, br2_ref) in res_p:
        Lp = L // 2
        # DPCNN pool: ConstantPad1d((0,1), 0) + MaxPool1d(3, stride=2), on lane blocks.
        cols = []
        for p in range(Lp):
            m = jnp.maximum(x[:, 2 * p * C:(2 * p + 1) * C],
                            x[:, (2 * p + 1) * C:(2 * p + 2) * C])
            if 2 * p + 2 < L:
                m = jnp.maximum(m, x[:, (2 * p + 2) * C:(2 * p + 3) * C])
            else:
                m = jnp.maximum(m, 0.0)          # the zero pad participates in the max
            cols.append(m)
        sc = cols[0] if Lp == 1 else jnp.concatenate(cols, axis=1)    # (B, Lp*C)
        z = jnp.maximum(sc * rs_ref[...] + rt_ref[...], 0.0)          # BN -> ReLU
        z = jnp.maximum(mm(z, r1_ref[...]) + br1_ref[...], 0.0)       # Conv3+BN -> ReLU
        z = mm(z, r2_ref[...]) + br2_ref[...]                         # Conv3
        x = z + sc
        L = Lp

    # ---- fc: Linear(+BN folded) -> ReLU -> Dropout -> Linear ----
    # TODO(synk): nn.Dropout(0.5) is identity under inference semantics.
    h = jnp.maximum(mm(x, k1_ref[...]) + bk1_ref[...], 0.0)
    out_ref[...] = mm(h, k2_ref[...]) + bk2_ref[...]             # (B, NUM_CLASSES)


# -----------------------------------------------------------------------------
# Wrapper: one pallas_call, all operands as whole VMEM blocks (footprint ~100 KB).
# -----------------------------------------------------------------------------
@jax.jit
def textcnn_forward(ids, *params):
    ids_flat = ids.astype(jnp.int32).reshape(-1)                 # (B*S,), batch-major
    pad = jnp.full((NQ_ROWS - N_TOK,), VOCAB_PAD - 1, dtype=jnp.int32)  # zero-embed row
    ids_col = jnp.concatenate([ids_flat, pad], axis=0).reshape(NQ_ROWS, 1)
    flat = [ids_col] + list(params)
    return pl.pallas_call(
        _textcnn_kernel,
        out_shape=jax.ShapeDtypeStruct((BATCH_SIZE, NUM_CLASSES), jnp.float32),
        in_specs=[pl.BlockSpec(memory_space=pltpu.MemorySpace.VMEM)] * len(flat),
        out_specs=pl.BlockSpec(memory_space=pltpu.MemorySpace.VMEM),
    )(*flat)


# -----------------------------------------------------------------------------
# Deterministic params + eval-mode BN folding + fused/banded weight assembly (glue).
# -----------------------------------------------------------------------------
def init_params(key):
    keys = iter(jax.random.split(key, 256))

    def nrm(shape, scale):
        return np.asarray(scale * jax.random.normal(next(keys), shape, dtype=jnp.float32))

    def bn(c):  # returns inference-mode affine (scale, shift)
        gamma = 1.0 + 0.1 * np.asarray(jax.random.normal(next(keys), (c,), dtype=jnp.float32))
        beta = 0.1 * np.asarray(jax.random.normal(next(keys), (c,), dtype=jnp.float32))
        mean = 0.05 * np.asarray(jax.random.normal(next(keys), (c,), dtype=jnp.float32))
        var = 1.0 + 0.1 * np.abs(np.asarray(jax.random.normal(next(keys), (c,), dtype=jnp.float32)))
        s = (gamma / np.sqrt(var + BN_EPS)).astype(np.float32)
        t = (beta - mean * s).astype(np.float32)
        return s, t

    def fold(w, b, s, t):               # (conv/linear) followed by BN in eval mode
        w_eff = w * s.reshape(-1, *([1] * (w.ndim - 1)))
        b_eff = b * s + t
        return w_eff.astype(np.float32), b_eff.astype(np.float32)

    def conv_matrix(w_oik, L, pad):     # Conv1d (torch layout (Cout,Cin,k)) -> lane matmul
        Co, Ci, k = w_oik.shape
        M = np.zeros((L * Ci, L * Co), np.float32)
        for p in range(L):
            for j in range(k):
                ps = p + j - pad
                if 0 <= ps < L:
                    M[ps * Ci:(ps + 1) * Ci, p * Co:(p + 1) * Co] = w_oik[:, :, j].T
        return M

    def tile_row(v, L):
        return np.tile(np.asarray(v, np.float32).reshape(1, -1), (1, L))

    bf = lambda a: jnp.asarray(a, dtype=jnp.bfloat16)
    f32 = lambda a: jnp.asarray(a, dtype=jnp.float32)

    params = []

    # --- embedding table, vocab padded to 128 with zero rows (sentinel id = 127) ---
    emb = np.zeros((VOCAB_PAD, EMBEDDING_DIM), np.float32)
    emb[:VOCAB_SIZE] = nrm((VOCAB_SIZE, EMBEDDING_DIM), 0.2)
    params.append(bf(emb))

    # --- head: fuse all first convs (64 out ch) and both dou second convs (32 out ch) ---
    first_w = np.zeros((2, EMBEDDING_DIM, NB_HEAD), np.float32)
    first_b = np.zeros((1, NB_HEAD), np.float32)
    second_w = np.zeros((3, NB_HEAD, NB_DOU), np.float32)
    second_b = np.zeros((1, NB_DOU), np.float32)
    mb1 = np.zeros((SENT_LEN, NB_HEAD), np.float32)
    mb2 = np.zeros((SENT_LEN, NB_DOU), np.float32)

    def pack_first(col, k):
        w = nrm((TITLE_DIM, EMBEDDING_DIM, k), 0.15)
        b = nrm((TITLE_DIM,), 0.05)
        w_eff, b_eff = fold(w, b, *bn(TITLE_DIM))
        for j in range(k):
            first_w[j, :, col:col + TITLE_DIM] = w_eff[:, :, j].T
        first_b[0, col:col + TITLE_DIM] = b_eff
        mb1[SENT_LEN - k + 1:, col:col + TITLE_DIM] = MASK_NEG    # invalid conv positions

    col = 0
    for k in SIN_KER_SIZE:
        pack_first(col, k)
        col += TITLE_DIM
    dcol = 0
    for (k0, k1) in DOU_KER_SIZE:
        pack_first(col, k0)
        w = nrm((TITLE_DIM, TITLE_DIM, k1), 0.15)
        b = nrm((TITLE_DIM,), 0.05)
        w_eff, b_eff = fold(w, b, *bn(TITLE_DIM))
        for j in range(k1):
            second_w[j, col:col + TITLE_DIM, dcol:dcol + TITLE_DIM] = w_eff[:, :, j].T
        second_b[0, dcol:dcol + TITLE_DIM] = b_eff
        mb2[SENT_LEN - k0 - k1 + 2:, dcol:dcol + TITLE_DIM] = MASK_NEG
        col += TITLE_DIM
        dcol += TITLE_DIM
    params.extend([bf(first_w), f32(first_b), bf(second_w), f32(second_b),
                   f32(mb1), f32(mb2)])

    # --- change_dim_conv (k=1) as a block-diagonal lane matmul over the 4 positions ---
    L0 = NUM_SEQ0
    wc = nrm((NUM_ID_FEATURE_MAP, TITLE_DIM, 1), 0.15)
    bc = nrm((NUM_ID_FEATURE_MAP,), 0.05)
    params.extend([bf(conv_matrix(wc, L0, pad=0)), f32(tile_row(bc, L0))])

    # --- self.conv: BN -> ReLU -> Conv3(pad1)+BN -> ReLU -> Conv3(pad1) ---
    s, t = bn(TITLE_DIM)
    params.extend([f32(tile_row(s, L0)), f32(tile_row(t, L0))])
    wa = nrm((NUM_ID_FEATURE_MAP, TITLE_DIM, 3), 0.15)
    ba = nrm((NUM_ID_FEATURE_MAP,), 0.05)
    wa_eff, ba_eff = fold(wa, ba, *bn(NUM_ID_FEATURE_MAP))
    params.extend([bf(conv_matrix(wa_eff, L0, pad=1)), f32(tile_row(ba_eff, L0))])
    wb = nrm((NUM_ID_FEATURE_MAP, NUM_ID_FEATURE_MAP, 3), 0.15)
    bb = nrm((NUM_ID_FEATURE_MAP,), 0.05)
    params.extend([bf(conv_matrix(wb, L0, pad=1)), f32(tile_row(bb, L0))])

    # --- resnet blocks ---
    for Lin in RES_LENS:
        Lp = Lin // 2
        s, t = bn(NUM_ID_FEATURE_MAP)
        params.extend([f32(tile_row(s, Lp)), f32(tile_row(t, Lp))])
        w1r = nrm((NUM_ID_FEATURE_MAP, NUM_ID_FEATURE_MAP, 3), 0.15)
        b1r = nrm((NUM_ID_FEATURE_MAP,), 0.05)
        w1r_eff, b1r_eff = fold(w1r, b1r, *bn(NUM_ID_FEATURE_MAP))
        params.extend([bf(conv_matrix(w1r_eff, Lp, pad=1)), f32(tile_row(b1r_eff, Lp))])
        w2r = nrm((NUM_ID_FEATURE_MAP, NUM_ID_FEATURE_MAP, 3), 0.15)
        b2r = nrm((NUM_ID_FEATURE_MAP,), 0.05)
        params.extend([bf(conv_matrix(w2r, Lp, pad=1)), f32(tile_row(b2r, Lp))])

    # --- fc: Linear(+BN(NUM_CLASSES) folded) -> ReLU -> Dropout -> Linear ---
    w1 = nrm((NUM_CLASSES, NUM_ID_FEATURE_MAP * FINAL_SEQ), 0.15)
    b1 = nrm((NUM_CLASSES,), 0.05)
    w1_eff, b1_eff = fold(w1, b1, *bn(NUM_CLASSES))
    # re-index torch's channel-major view(B,-1) flatten to the kernel's pos-major lanes
    k1m = np.transpose(w1_eff.reshape(NUM_CLASSES, NUM_ID_FEATURE_MAP, FINAL_SEQ),
                       (2, 1, 0)).reshape(FINAL_SEQ * NUM_ID_FEATURE_MAP, NUM_CLASSES)
    params.extend([bf(k1m), f32(b1_eff.reshape(1, -1))])
    w2 = nrm((NUM_CLASSES, NUM_CLASSES), 0.15)
    b2 = nrm((NUM_CLASSES,), 0.05)
    params.extend([bf(w2.T), f32(b2.reshape(1, -1))])
    return params


if __name__ == "__main__":
    key = jax.random.PRNGKey(0)
    k_ids, k_par = jax.random.split(key)
    ids = jax.random.randint(k_ids, (BATCH_SIZE, SENT_LEN), 0, VOCAB_SIZE,
                             dtype=jnp.int32)
    params = init_params(k_par)
    out = textcnn_forward(ids, *params)
    out = jax.block_until_ready(out)
    assert out.shape == (BATCH_SIZE, NUM_CLASSES)
    assert bool(jnp.all(jnp.isfinite(out)))
    print("KERNEL_OK")
</pallas_src>

<mosaic_0001>
module attributes {stable_mosaic.version = 11 : i64} {
  func.func @_textcnn_kernel(%arg0: memref<40x1xi32, #tpu.memory_space<vmem>>, %arg1: memref<128x32xbf16, #tpu.memory_space<vmem>>, %arg2: memref<2x32x64xbf16, #tpu.memory_space<vmem>>, %arg3: memref<1x64xf32, #tpu.memory_space<vmem>>, %arg4: memref<3x64x32xbf16, #tpu.memory_space<vmem>>, %arg5: memref<1x32xf32, #tpu.memory_space<vmem>>, %arg6: memref<16x64xf32, #tpu.memory_space<vmem>>, %arg7: memref<16x32xf32, #tpu.memory_space<vmem>>, %arg8: memref<64x64xbf16, #tpu.memory_space<vmem>>, %arg9: memref<1x64xf32, #tpu.memory_space<vmem>>, %arg10: memref<1x64xf32, #tpu.memory_space<vmem>>, %arg11: memref<1x64xf32, #tpu.memory_space<vmem>>, %arg12: memref<64x64xbf16, #tpu.memory_space<vmem>>, %arg13: memref<1x64xf32, #tpu.memory_space<vmem>>, %arg14: memref<64x64xbf16, #tpu.memory_space<vmem>>, %arg15: memref<1x64xf32, #tpu.memory_space<vmem>>, %arg16: memref<1x32xf32, #tpu.memory_space<vmem>>, %arg17: memref<1x32xf32, #tpu.memory_space<vmem>>, %arg18: memref<32x32xbf16, #tpu.memory_space<vmem>>, %arg19: memref<1x32xf32, #tpu.memory_space<vmem>>, %arg20: memref<32x32xbf16, #tpu.memory_space<vmem>>, %arg21: memref<1x32xf32, #tpu.memory_space<vmem>>, %arg22: memref<32x8xbf16, #tpu.memory_space<vmem>>, %arg23: memref<1x8xf32, #tpu.memory_space<vmem>>, %arg24: memref<8x8xbf16, #tpu.memory_space<vmem>>, %arg25: memref<1x8xf32, #tpu.memory_space<vmem>>, %arg26: memref<2x8xf32, #tpu.memory_space<vmem>>) attributes {dimension_semantics = [], scalar_prefetch = 0 : i64, scratch_operands = 0 : i64, tpu.core_type = #tpu.core_type<tc>} {
    %c0 = arith.constant 0 : index
    %c0_0 = arith.constant 0 : index
    %0 = vector.load %arg0[%c0, %c0_0] : memref<40x1xi32, #tpu.memory_space<vmem>>, vector<40x1xi32>
    %1 = tpu.iota {dimensions = array<i32: 1>} : vector<40x128xi32>
    %2 = vector.broadcast %0 : vector<40x1xi32> to vector<40x128xi32>
    %3 = arith.cmpi eq, %2, %1 : vector<40x128xi32>
    %4 = arith.extui %3 : vector<40x128xi1> to vector<40x128xi32>
    %5 = arith.sitofp %4 : vector<40x128xi32> to vector<40x128xf32>
    %c0_1 = arith.constant 0 : index
    %c0_2 = arith.constant 0 : index
    %6 = vector.load %arg1[%c0_1, %c0_2] : memref<128x32xbf16, #tpu.memory_space<vmem>>, vector<128x32xbf16>
    %7 = arith.truncf %5 : vector<40x128xf32> to vector<40x128xbf16>
    %cst = arith.constant dense<0.000000e+00> : vector<40x32xf32>
    %8 = tpu.matmul %7, %6, %cst {dimension_numbers = #tpu.dot_dimension_numbers<[1], [0], [0], [1], [0, 0, 1, 1], [], []>} : vector<40x128xbf16>, vector<128x32xbf16>, vector<40x32xf32> -> vector<40x32xf32>
    %9 = vector.extract_strided_slice %8 {offsets = [0, 0], sizes = [34, 32], strides = [1, 1]} : vector<40x32xf32> to vector<34x32xf32>
    %c0_3 = arith.constant 0 : index
    %c0_4 = arith.constant 0 : index
    %c0_5 = arith.constant 0 : index
    %10 = vector.load %arg2[%c0_3, %c0_4, %c0_5] : memref<2x32x64xbf16, #tpu.memory_space<vmem>>, vector<1x32x64xbf16>
    %11 = vector.shape_cast %10 : vector<1x32x64xbf16> to vector<32x64xbf16>
    %12 = arith.truncf %9 : vector<34x32xf32> to vector<34x32xbf16>
    %cst_6 = arith.constant dense<0.000000e+00> : vector<34x64xf32>
    %13 = tpu.matmul %12, %11, %cst_6 {dimension_numbers = #tpu.dot_dimension_numbers<[1], [0], [0], [1], [0, 0, 1, 1], [], []>} : vector<34x32xbf16>, vector<32x64xbf16>, vector<34x64xf32> -> vector<34x64xf32>
    %14 = vector.extract_strided_slice %8 {offsets = [1, 0], sizes = [34, 32], strides = [1, 1]} : vector<40x32xf32> to vector<34x32xf32>
    %c1 = arith.constant 1 : index
    %c0_7 = arith.constant 0 : index
    %c0_8 = arith.constant 0 : index
    %15 = vector.load %arg2[%c1, %c0_7, %c0_8] : memref<2x32x64xbf16, #tpu.memory_space<vmem>>, vector<1x32x64xbf16>
    %16 = vector.shape_cast %15 : vector<1x32x64xbf16> to vector<32x64xbf16>
    %17 = arith.truncf %14 : vector<34x32xf32> to vector<34x32xbf16>
    %cst_9 = arith.constant dense<0.000000e+00> : vector<34x64xf32>
    %18 = tpu.matmul %17, %16, %cst_9 {dimension_numbers = #tpu.dot_dimension_numbers<[1], [0], [0], [1], [0, 0, 1, 1], [], []>} : vector<34x32xbf16>, vector<32x64xbf16>, vector<34x64xf32> -> vector<34x64xf32>
    %19 = arith.addf %13, %18 : vector<34x64xf32>
    %c0_10 = arith.constant 0 : index
    %c0_11 = arith.constant 0 : index
    %20 = vector.load %arg3[%c0_10, %c0_11] : memref<1x64xf32, #tpu.memory_space<vmem>>, vector<1x64xf32>
    %21 = vector.broadcast %20 : vector<1x64xf32> to vector<34x64xf32>
    %22 = arith.addf %19, %21 : vector<34x64xf32>
    %cst_12 = arith.constant 0.000000e+00 : f32
    %23 = vector.broadcast %cst_12 : f32 to vector<34x64xf32>
    %24 = arith.maximumf %22, %23 : vector<34x64xf32>
    %25 = vector.extract_strided_slice %24 {offsets = [0, 0], sizes = [32, 64], strides = [1, 1]} : vector<34x64xf32> to vector<32x64xf32>
    %c0_13 = arith.constant 0 : index
    %c0_14 = arith.constant 0 : index
    %c0_15 = arith.constant 0 : index
    %26 = vector.load %arg4[%c0_13, %c0_14, %c0_15] : memref<3x64x32xbf16, #tpu.memory_space<vmem>>, vector<1x64x32xbf16>
    %27 = vector.shape_cast %26 : vector<1x64x32xbf16> to vector<64x32xbf16>
    %28 = arith.truncf %25 : vector<32x64xf32> to vector<32x64xbf16>
    %cst_16 = arith.constant dense<0.000000e+00> : vector<32x32xf32>
    %29 = tpu.matmul %28, %27, %cst_16 {dimension_numbers = #tpu.dot_dimension_numbers<[1], [0], [0], [1], [0, 0, 1, 1], [], []>} : vector<32x64xbf16>, vector<64x32xbf16>, vector<32x32xf32> -> vector<32x32xf32>
    %30 = vector.extract_strided_slice %24 {offsets = [1, 0], sizes = [32, 64], strides = [1, 1]} : vector<34x64xf32> to vector<32x64xf32>
    %c1_17 = arith.constant 1 : index
    %c0_18 = arith.constant 0 : index
    %c0_19 = arith.constant 0 : index
    %31 = vector.load %arg4[%c1_17, %c0_18, %c0_19] : memref<3x64x32xbf16, #tpu.memory_space<vmem>>, vector<1x64x32xbf16>
    %32 = vector.shape_cast %31 : vector<1x64x32xbf16> to vector<64x32xbf16>
    %33 = arith.truncf %30 : vector<32x64xf32> to vector<32x64xbf16>
    %cst_20 = arith.constant dense<0.000000e+00> : vector<32x32xf32>
    %34 = tpu.matmul %33, %32, %cst_20 {dimension_numbers = #tpu.dot_dimension_numbers<[1], [0], [0], [1], [0, 0, 1, 1], [], []>} : vector<32x64xbf16>, vector<64x32xbf16>, vector<32x32xf32> -> vector<32x32xf32>
    %35 = arith.addf %29, %34 : vector<32x32xf32>
    %36 = vector.extract_strided_slice %24 {offsets = [2, 0], sizes = [32, 64], strides = [1, 1]} : vector<34x64xf32> to vector<32x64xf32>
    %c2 = arith.constant 2 : index
    %c0_21 = arith.constant 0 : index
    %c0_22 = arith.constant 0 : index
    %37 = vector.load %arg4[%c2, %c0_21, %c0_22] : memref<3x64x32xbf16, #tpu.memory_space<vmem>>, vector<1x64x32xbf16>
    %38 = vector.shape_cast %37 : vector<1x64x32xbf16> to vector<64x32xbf16>
    %39 = arith.truncf %36 : vector<32x64xf32> to vector<32x64xbf16>
    %cst_23 = arith.constant dense<0.000000e+00> : vector<32x32xf32>
    %40 = tpu.matmul %39, %38, %cst_23 {dimension_numbers = #tpu.dot_dimension_numbers<[1], [0], [0], [1], [0, 0, 1, 1], [], []>} : vector<32x64xbf16>, vector<64x32xbf16>, vector<32x32xf32> -> vector<32x32xf32>
    %41 = arith.addf %35, %40 : vector<32x32xf32>
    %c0_24 = arith.constant 0 : index
    %c0_25 = arith.constant 0 : index
    %42 = vector.load %arg5[%c0_24, %c0_25] : memref<1x32xf32, #tpu.memory_space<vmem>>, vector<1x32xf32>
    %43 = vector.broadcast %42 : vector<1x32xf32> to vector<32x32xf32>
    %44 = arith.addf %41, %43 : vector<32x32xf32>
    %cst_26 = arith.constant 0.000000e+00 : f32
    %45 = vector.broadcast %cst_26 : f32 to vector<32x32xf32>
    %46 = arith.maximumf %44, %45 : vector<32x32xf32>
    %c0_27 = arith.constant 0 : index
    %c0_28 = arith.constant 0 : index
    %47 = vector.load %arg6[%c0_27, %c0_28] : memref<16x64xf32, #tpu.memory_space<vmem>>, vector<16x64xf32>
    %c0_29 = arith.constant 0 : index
    %c0_30 = arith.constant 0 : index
    %48 = vector.load %arg7[%c0_29, %c0_30] : memref<16x32xf32, #tpu.memory_space<vmem>>, vector<16x32xf32>
    %49 = vector.extract_strided_slice %24 {offsets = [0, 0], sizes = [16, 64], strides = [1, 1]} : vector<34x64xf32> to vector<16x64xf32>
    %50 = arith.addf %49, %47 : vector<16x64xf32>
    %cst_31 = arith.constant dense<0xFF800000> : vector<64xf32>
    %51 = vector.multi_reduction <maximumf>, %50, %cst_31 [0] : vector<16x64xf32> to vector<64xf32>
    %52 = vector.shape_cast %51 : vector<64xf32> to vector<1x64xf32>
    %53 = vector.extract_strided_slice %46 {offsets = [0, 0], sizes = [16, 32], strides = [1, 1]} : vector<32x32xf32> to vector<16x32xf32>
    %54 = arith.addf %53, %48 : vector<16x32xf32>
    %cst_32 = arith.constant dense<0xFF800000> : vector<32xf32>
    %55 = vector.multi_reduction <maximumf>, %54, %cst_32 [0] : vector<16x32xf32> to vector<32xf32>
    %56 = vector.shape_cast %55 : vector<32xf32> to vector<1x32xf32>
    %57 = vector.extract_strided_slice %52 {offsets = [0, 0], sizes = [1, 32], strides = [1, 1]} : vector<1x64xf32> to vector<1x32xf32>
    %58 = tpu.concatenate %57, %56 in 1 : vector<1x32xf32>, vector<1x32xf32> -> vector<1x64xf32>
    %59 = vector.extract_strided_slice %24 {offsets = [16, 0], sizes = [16, 64], strides = [1, 1]} : vector<34x64xf32> to vector<16x64xf32>
    %60 = arith.addf %59, %47 : vector<16x64xf32>
    %cst_33 = arith.constant dense<0xFF800000> : vector<64xf32>
    %61 = vector.multi_reduction <maximumf>, %60, %cst_33 [0] : vector<16x64xf32> to vector<64xf32>
    %62 = vector.shape_cast %61 : vector<64xf32> to vector<1x64xf32>
    %63 = vector.extract_strided_slice %46 {offsets = [16, 0], sizes = [16, 32], strides = [1, 1]} : vector<32x32xf32> to vector<16x32xf32>
    %64 = arith.addf %63, %48 : vector<16x32xf32>
    %cst_34 = arith.constant dense<0xFF800000> : vector<32xf32>
    %65 = vector.multi_reduction <maximumf>, %64, %cst_34 [0] : vector<16x32xf32> to vector<32xf32>
    %66 = vector.shape_cast %65 : vector<32xf32> to vector<1x32xf32>
    %67 = vector.extract_strided_slice %62 {offsets = [0, 0], sizes = [1, 32], strides = [1, 1]} : vector<1x64xf32> to vector<1x32xf32>
    %68 = tpu.concatenate %67, %66 in 1 : vector<1x32xf32>, vector<1x32xf32> -> vector<1x64xf32>
    %69 = tpu.concatenate %58, %68 in 0 : vector<1x64xf32>, vector<1x64xf32> -> vector<2x64xf32>
    %c0_35 = arith.constant 0 : index
    %c0_36 = arith.constant 0 : index
    %70 = vector.load %arg8[%c0_35, %c0_36] : memref<64x64xbf16, #tpu.memory_space<vmem>>, vector<64x64xbf16>
    %71 = arith.truncf %69 : vector<2x64xf32> to vector<2x64xbf16>
    %cst_37 = arith.constant dense<0.000000e+00> : vector<2x64xf32>
    %72 = tpu.matmul %71, %70, %cst_37 {dimension_numbers = #tpu.dot_dimension_numbers<[1], [0], [0], [1], [0, 0, 1, 1], [], []>} : vector<2x64xbf16>, vector<64x64xbf16>, vector<2x64xf32> -> vector<2x64xf32>
    %c0_38 = arith.constant 0 : index
    %c0_39 = arith.constant 0 : index
    %73 = vector.load %arg9[%c0_38, %c0_39] : memref<1x64xf32, #tpu.memory_space<vmem>>, vector<1x64xf32>
    %74 = vector.broadcast %73 : vector<1x64xf32> to vector<2x64xf32>
    %75 = arith.addf %72, %74 : vector<2x64xf32>
    %c0_40 = arith.constant 0 : index
    %c0_41 = arith.constant 0 : index
    %76 = vector.load %arg10[%c0_40, %c0_41] : memref<1x64xf32, #tpu.memory_space<vmem>>, vector<1x64xf32>
    %77 = vector.broadcast %76 : vector<1x64xf32> to vector<2x64xf32>
    %78 = arith.mulf %69, %77 : vector<2x64xf32>
    %c0_42 = arith.constant 0 : index
    %c0_43 = arith.constant 0 : index
    %79 = vector.load %arg11[%c0_42, %c0_43] : memref<1x64xf32, #tpu.memory_space<vmem>>, vector<1x64xf32>
    %80 = vector.broadcast %79 : vector<1x64xf32> to vector<2x64xf32>
    %81 = arith.addf %78, %80 : vector<2x64xf32>
    %cst_44 = arith.constant 0.000000e+00 : f32
    %82 = vector.broadcast %cst_44 : f32 to vector<2x64xf32>
    %83 = arith.maximumf %81, %82 : vector<2x64xf32>
    %c0_45 = arith.constant 0 : index
    %c0_46 = arith.constant 0 : index
    %84 = vector.load %arg12[%c0_45, %c0_46] : memref<64x64xbf16, #tpu.memory_space<vmem>>, vector<64x64xbf16>
    %85 = arith.truncf %83 : vector<2x64xf32> to vector<2x64xbf16>
    %cst_47 = arith.constant dense<0.000000e+00> : vector<2x64xf32>
    %86 = tpu.matmul %85, %84, %cst_47 {dimension_numbers = #tpu.dot_dimension_numbers<[1], [0], [0], [1], [0, 0, 1, 1], [], []>} : vector<2x64xbf16>, vector<64x64xbf16>, vector<2x64xf32> -> vector<2x64xf32>
    %c0_48 = arith.constant 0 : index
    %c0_49 = arith.constant 0 : index
    %87 = vector.load %arg13[%c0_48, %c0_49] : memref<1x64xf32, #tpu.memory_space<vmem>>, vector<1x64xf32>
    %88 = vector.broadcast %87 : vector<1x64xf32> to vector<2x64xf32>
    %89 = arith.addf %86, %88 : vector<2x64xf32>
    %cst_50 = arith.constant 0.000000e+00 : f32
    %90 = vector.broadcast %cst_50 : f32 to vector<2x64xf32>
    %91 = arith.maximumf %89, %90 : vector<2x64xf32>
    %c0_51 = arith.constant 0 : index
    %c0_52 = arith.constant 0 : index
    %92 = vector.load %arg14[%c0_51, %c0_52] : memref<64x64xbf16, #tpu.memory_space<vmem>>, vector<64x64xbf16>
    %93 = arith.truncf %91 : vector<2x64xf32> to vector<2x64xbf16>
    %cst_53 = arith.constant dense<0.000000e+00> : vector<2x64xf32>
    %94 = tpu.matmul %93, %92, %cst_53 {dimension_numbers = #tpu.dot_dimension_numbers<[1], [0], [0], [1], [0, 0, 1, 1], [], []>} : vector<2x64xbf16>, vector<64x64xbf16>, vector<2x64xf32> -> vector<2x64xf32>
    %c0_54 = arith.constant 0 : index
    %c0_55 = arith.constant 0 : index
    %95 = vector.load %arg15[%c0_54, %c0_55] : memref<1x64xf32, #tpu.memory_space<vmem>>, vector<1x64xf32>
    %96 = vector.broadcast %95 : vector<1x64xf32> to vector<2x64xf32>
    %97 = arith.addf %94, %96 : vector<2x64xf32>
    %98 = arith.addf %97, %75 : vector<2x64xf32>
    %99 = vector.extract_strided_slice %98 {offsets = [0, 0], sizes = [2, 16], strides = [1, 1]} : vector<2x64xf32> to vector<2x16xf32>
    %100 = vector.extract_strided_slice %98 {offsets = [0, 16], sizes = [2, 16], strides = [1, 1]} : vector<2x64xf32> to vector<2x16xf32>
    %101 = arith.maximumf %99, %100 : vector<2x16xf32>
    %102 = vector.extract_strided_slice %98 {offsets = [0, 32], sizes = [2, 16], strides = [1, 1]} : vector<2x64xf32> to vector<2x16xf32>
    %103 = arith.maximumf %101, %102 : vector<2x16xf32>
    %104 = vector.extract_strided_slice %98 {offsets = [0, 32], sizes = [2, 16], strides = [1, 1]} : vector<2x64xf32> to vector<2x16xf32>
    %105 = vector.extract_strided_slice %98 {offsets = [0, 48], sizes = [2, 16], strides = [1, 1]} : vector<2x64xf32> to vector<2x16xf32>
    %106 = arith.maximumf %104, %105 : vector<2x16xf32>
    %cst_56 = arith.constant 0.000000e+00 : f32
    %107 = vector.broadcast %cst_56 : f32 to vector<2x16xf32>
    %108 = arith.maximumf %106, %107 : vector<2x16xf32>
    %109 = tpu.concatenate %103, %108 in 1 : vector<2x16xf32>, vector<2x16xf32> -> vector<2x32xf32>
    %c0_57 = arith.constant 0 : index
    %c0_58 = arith.constant 0 : index
    %110 = vector.load %arg16[%c0_57, %c0_58] : memref<1x32xf32, #tpu.memory_space<vmem>>, vector<1x32xf32>
    %111 = vector.broadcast %110 : vector<1x32xf32> to vector<2x32xf32>
    %112 = arith.mulf %109, %111 : vector<2x32xf32>
    %c0_59 = arith.constant 0 : index
    %c0_60 = arith.constant 0 : index
    %113 = vector.load %arg17[%c0_59, %c0_60] : memref<1x32xf32, #tpu.memory_space<vmem>>, vector<1x32xf32>
    %114 = vector.broadcast %113 : vector<1x32xf32> to vector<2x32xf32>
    %115 = arith.addf %112, %114 : vector<2x32xf32>
    %cst_61 = arith.constant 0.000000e+00 : f32
    %116 = vector.broadcast %cst_61 : f32 to vector<2x32xf32>
    %117 = arith.maximumf %115, %116 : vector<2x32xf32>
    %c0_62 = arith.constant 0 : index
    %c0_63 = arith.constant 0 : index
    %118 = vector.load %arg18[%c0_62, %c0_63] : memref<32x32xbf16, #tpu.memory_space<vmem>>, vector<32x32xbf16>
    %119 = arith.truncf %117 : vector<2x32xf32> to vector<2x32xbf16>
    %cst_64 = arith.constant dense<0.000000e+00> : vector<2x32xf32>
    %120 = tpu.matmul %119, %118, %cst_64 {dimension_numbers = #tpu.dot_dimension_numbers<[1], [0], [0], [1], [0, 0, 1, 1], [], []>} : vector<2x32xbf16>, vector<32x32xbf16>, vector<2x32xf32> -> vector<2x32xf32>
    %c0_65 = arith.constant 0 : index
    %c0_66 = arith.constant 0 : index
    %121 = vector.load %arg19[%c0_65, %c0_66] : memref<1x32xf32, #tpu.memory_space<vmem>>, vector<1x32xf32>
    %122 = vector.broadcast %121 : vector<1x32xf32> to vector<2x32xf32>
    %123 = arith.addf %120, %122 : vector<2x32xf32>
    %cst_67 = arith.constant 0.000000e+00 : f32
    %124 = vector.broadcast %cst_67 : f32 to vector<2x32xf32>
    %125 = arith.maximumf %123, %124 : vector<2x32xf32>
    %c0_68 = arith.constant 0 : index
    %c0_69 = arith.constant 0 : index
    %126 = vector.load %arg20[%c0_68, %c0_69] : memref<32x32xbf16, #tpu.memory_space<vmem>>, vector<32x32xbf16>
    %127 = arith.truncf %125 : vector<2x32xf32> to vector<2x32xbf16>
    %cst_70 = arith.constant dense<0.000000e+00> : vector<2x32xf32>
    %128 = tpu.matmul %127, %126, %cst_70 {dimension_numbers = #tpu.dot_dimension_numbers<[1], [0], [0], [1], [0, 0, 1, 1], [], []>} : vector<2x32xbf16>, vector<32x32xbf16>, vector<2x32xf32> -> vector<2x32xf32>
    %c0_71 = arith.constant 0 : index
    %c0_72 = arith.constant 0 : index
    %129 = vector.load %arg21[%c0_71, %c0_72] : memref<1x32xf32, #tpu.memory_space<vmem>>, vector<1x32xf32>
    %130 = vector.broadcast %129 : vector<1x32xf32> to vector<2x32xf32>
    %131 = arith.addf %128, %130 : vector<2x32xf32>
    %132 = arith.addf %131, %109 : vector<2x32xf32>
    %c0_73 = arith.constant 0 : index
    %c0_74 = arith.constant 0 : index
    %133 = vector.load %arg22[%c0_73, %c0_74] : memref<32x8xbf16, #tpu.memory_space<vmem>>, vector<32x8xbf16>
    %134 = arith.truncf %132 : vector<2x32xf32> to vector<2x32xbf16>
    %cst_75 = arith.constant dense<0.000000e+00> : vector<2x8xf32>
    %135 = tpu.matmul %134, %133, %cst_75 {dimension_numbers = #tpu.dot_dimension_numbers<[1], [0], [0], [1], [0, 0, 1, 1], [], []>} : vector<2x32xbf16>, vector<32x8xbf16>, vector<2x8xf32> -> vector<2x8xf32>
    %c0_76 = arith.constant 0 : index
    %c0_77 = arith.constant 0 : index
    %136 = vector.load %arg23[%c0_76, %c0_77] : memref<1x8xf32, #tpu.memory_space<vmem>>, vector<1x8xf32>
    %137 = vector.broadcast %136 : vector<1x8xf32> to vector<2x8xf32>
    %138 = arith.addf %135, %137 : vector<2x8xf32>
    %cst_78 = arith.constant 0.000000e+00 : f32
    %139 = vector.broadcast %cst_78 : f32 to vector<2x8xf32>
    %140 = arith.maximumf %138, %139 : vector<2x8xf32>
    %c0_79 = arith.constant 0 : index
    %c0_80 = arith.constant 0 : index
    %141 = vector.load %arg24[%c0_79, %c0_80] : memref<8x8xbf16, #tpu.memory_space<vmem>>, vector<8x8xbf16>
    %142 = arith.truncf %140 : vector<2x8xf32> to vector<2x8xbf16>
    %cst_81 = arith.constant dense<0.000000e+00> : vector<2x8xf32>
    %143 = tpu.matmul %142, %141, %cst_81 {dimension_numbers = #tpu.dot_dimension_numbers<[1], [0], [0], [1], [0, 0, 1, 1], [], []>} : vector<2x8xbf16>, vector<8x8xbf16>, vector<2x8xf32> -> vector<2x8xf32>
    %c0_82 = arith.constant 0 : index
    %c0_83 = arith.constant 0 : index
    %144 = vector.load %arg25[%c0_82, %c0_83] : memref<1x8xf32, #tpu.memory_space<vmem>>, vector<1x8xf32>
    %145 = vector.broadcast %144 : vector<1x8xf32> to vector<2x8xf32>
    %146 = arith.addf %143, %145 : vector<2x8xf32>
    %c0_84 = arith.constant 0 : index
    %c0_85 = arith.constant 0 : index
    %147 = vector.load %arg26[%c0_84, %c0_85] : memref<2x8xf32, #tpu.memory_space<vmem>>, vector<2x8xf32>
    tpu.vector_store %arg26[%c0_84, %c0_85], %146 {strides = array<i32>} : memref<2x8xf32, #tpu.memory_space<vmem>>, vector<2x8xf32>,
    return
  }
}

</mosaic_0001>

<bundles_post_ra>
// kernel: textcnn_forward.1
= control target key start
LH: loop header
LB: loop body
LE: loop exit
PB: predicated region body
PF: predicated region fallthrough
CT: control target
= control target key end

     0   :  { %s2260_s0 = inlined_call_operand.vmem [shape: s32[40,1], index: 0, kind: input, shape index: {}]   ;;  %s2261_s1 = inlined_call_operand.vmem [shape: bf16[128,32], index: 1, kind: input, shape index: {}]   ;;  %s2262_s2 = inlined_call_operand.vmem [shape: bf16[2,32,64], index: 2, kind: input, shape index: {}]   ;;  %s2263_s3 = inlined_call_operand.vmem [shape: f32[1,64], index: 3, kind: input, shape index: {}]   ;;  %s2264_s4 = inlined_call_operand.vmem [shape: bf16[3,64,32], index: 4, kind: input, shape index: {}]   ;;  %s2265_s5 = inlined_call_operand.vmem [shape: f32[1,32], index: 5, kind: input, shape index: {}]   ;;  %s2266_s6 = inlined_call_operand.vmem [shape: f32[16,64], index: 6, kind: input, shape index: {}]   ;;  %s2267_s7 = inlined_call_operand.vmem [shape: f32[16,32], index: 7, kind: input, shape index: {}]   ;;  %s2268_s8 = inlined_call_operand.vmem [shape: bf16[64,64], index: 8, kind: input, shape index: {}]   ;;  %s2269_s9 = inlined_call_operand.vmem [shape: f32[1,64], index: 9, kind: input, shape index: {}]   ;;  %s2270_s10 = inlined_call_operand.vmem [shape: f32[1,64], index: 10, kind: input, shape index: {}]   ;;  %s2271_s11 = inlined_call_operand.vmem [shape: f32[1,64], index: 11, kind: input, shape index: {}]   ;;  %s2272_s12 = inlined_call_operand.vmem [shape: bf16[64,64], index: 12, kind: input, shape index: {}]   ;;  %s2273_s13 = inlined_call_operand.vmem [shape: f32[1,64], index: 13, kind: input, shape index: {}]   ;;  %s2274_s14 = inlined_call_operand.vmem [shape: bf16[64,64], index: 14, kind: input, shape index: {}]   ;;  %s2275_s15 = inlined_call_operand.vmem [shape: f32[1,64], index: 15, kind: input, shape index: {}]   ;;  %s2276_s16 = inlined_call_operand.vmem [shape: f32[1,32], index: 16, kind: input, shape index: {}]   ;;  %s2277_s17 = inlined_call_operand.vmem [shape: f32[1,32], index: 17, kind: input, shape index: {}]   ;;  %s2278_s18 = inlined_call_operand.vmem [shape: bf16[32,32], index: 18, kind: input, shape index: {}]   ;;  %s2279_s19 = inlined_call_operand.vmem [shape: f32[1,32], index: 19, kind: input, shape index: {}]   ;;  %s2280_s20 = inlined_call_operand.vmem [shape: bf16[32,32], index: 20, kind: input, shape index: {}]   ;;  %s2281_s21 = inlined_call_operand.vmem [shape: f32[1,32], index: 21, kind: input, shape index: {}]   ;;  %s2282_s22 = inlined_call_operand.vmem [shape: bf16[32,8], index: 22, kind: input, shape index: {}]   ;;  %s2283_s23 = inlined_call_operand.vmem [shape: f32[1,8], index: 23, kind: input, shape index: {}]   ;;  %s2284_s24 = inlined_call_operand.vmem [shape: bf16[8,8], index: 24, kind: input, shape index: {}]   ;;  %s2285_s25 = inlined_call_operand.vmem [shape: f32[1,8], index: 25, kind: input, shape index: {}]   ;;  %s2286_s26 = inlined_call_operand.hbm [shape: f32[2,8], index: 26, kind: output, shape index: {}]  }
   0x1   :  { %2294 = sst [smem:[#allocation5_spill]] %s2260_s0 }
   0x2   :  { %2295 = sst [smem:[#allocation6_spill]] %s2261_s1 }
   0x3   :  { %2296 = sst [smem:[#allocation7_spill]] %s2262_s2 }
   0x4   :  { %2297 = sst [smem:[#allocation8_spill]] %s2263_s3 }
   0x5   :  { %2298 = sst [smem:[#allocation9_spill]] %s2264_s4 }
   0x6   :  { %2299 = sst [smem:[#allocation10_spill]] %s2265_s5 }
   0x7   :  { %2300 = sst [smem:[#allocation11_spill]] %s2266_s6 }
   0x8   :  { %2301 = sst [smem:[#allocation12_spill]] %s2267_s7 }
   0x9   :  { %2302 = sst [smem:[#allocation13_spill]] %s2268_s8 }
   0xa   :  { %2303 = sst [smem:[#allocation14_spill]] %s2269_s9 }
   0xb   :  { %2304 = sst [smem:[#allocation15_spill]] %s2270_s10 }
   0xc   :  { %s2305_s7 = sld [smem:[#allocation5_spill]]  ;;  %v1810_v2 = vmov 0   ;;  %v1811_v6 = vmov 0.0   ;;  %vm1812_vm0 = vmmov 0  }
   0xd   :  { %1744 = vset.pattern.permute.xlu0 %v1810_v2  ;;  %1745 = vset.pattern.permute.xlu1 %v1810_v2  ;;  %s2306_s30 = sld [smem:[#allocation6_spill]] }
   0xe   :  { %1574 = vmatprep.subr.bf16.mxu0 %v1811_v6  ;;  %1602 = vmatprep.subr.bf16.mxu1 %v1811_v6 }
   0xf   :  { %1590 = vmatprep.mubr.msk.bf16.mxu0 %vm1812_vm0, %v1811_v6  ;;  %1606 = vmatprep.mubr.msk.bf16.mxu1 %vm1812_vm0, %v1811_v6 }
  0x12   :  { %v85_v0 = vld [vmem:[%s2305_s7] sm:$0xff]  ;;  %v87_v1 = vld [vmem:[%s2305_s7 + $0x10] sm:$0xff]  ;;  %v86_v3 = vld [vmem:[%s2305_s7 + $0x8] sm:$0xff] }
  0x13   :  { %93 = vperm.xlu0 %1744, %v85_v0   ;;  %99 = vperm.xlu1 %1745, %v87_v1   ;;  %v1746_v4 = vld [vmem:[%s2306_s30 + $0x38] sm:$0xff]   ;;  %v1747_v7 = vld [vmem:[%s2306_s30 + $0x30] sm:$0xff]   ;;  %v89_v8 = vld [vmem:[%s2305_s7 + $0x20] sm:$0xff] }
  0x14   :  { %v88_v5 = vld [vmem:[%s2305_s7 + $0x18] sm:$0xff]  ;;  %1575 = vmatpush3.bf16.msra.mxu0 %v1746_v4  ;;  %v1748_v9 = vld [vmem:[%s2306_s30 + $0x28] sm:$0xff]   ;;  %v1749_v10 = vld [vmem:[%s2306_s30 + $0x20] sm:$0xff]  }
  0x15   :  { %1576 = vmatprep.subr.bf16.mxu0 %v1811_v6  ;;  %v1750_v11 = vld [vmem:[%s2306_s30 + $0x18] sm:$0xff]   ;;  %v1751_v12 = vld [vmem:[%s2306_s30 + $0x10] sm:$0xff]   ;;  %v1752_v13 = vld [vmem:[%s2306_s30 + $0x8] sm:$0xff]  }
  0x16   :  { %v1753_v14 = vld [vmem:[%s2306_s30] sm:$0xff]  }
  0x17   :  { %96 = vperm.xlu0 %1744, %v86_v3   ;;  %102 = vperm.xlu1 %1745, %v88_v5  }
  0x18   :  { %1577 = vmatpush3.bf16.msra.mxu0 %v1747_v7 }
  0x19   :  { %1578 = vmatprep.subr.bf16.mxu0 %v1811_v6 }
  0x1b   :  { %105 = vperm.xlu0 %1744, %v89_v8  }
  0x1c   :  { %1579 = vmatpush3.bf16.msra.mxu0 %v1748_v9 }
  0x1d   :  { %1580 = vmatprep.subr.bf16.mxu0 %v1811_v6 }
  0x20   :  { %1581 = vmatpush3.bf16.msra.mxu0 %v1749_v10 }
  0x21   :  { %1582 = vmatprep.subr.bf16.mxu0 %v1811_v6 }
  0x24   :  { %1583 = vmatpush3.bf16.msra.mxu0 %v1750_v11 }
  0x25   :  { %1584 = vmatprep.subr.bf16.mxu0 %v1811_v6 }
  0x28   :  { %1585 = vmatpush3.bf16.msra.mxu0 %v1751_v12 }
  0x29   :  { %1586 = vmatprep.subr.bf16.mxu0 %v1811_v6 }
  0x2c   :  { %1587 = vmatpush3.bf16.msra.mxu0 %v1752_v13 }
  0x2d   :  { %1588 = vmatprep.subr.bf16.mxu0 %v1811_v6 }
  0x30   :  { %1589 = vmatpush3.bf16.msra.mxu0 %v1753_v14 }
  0x31   :  { %31 = vsyncpa [#allocation3], 0  ;;  %v90_v15 = vlaneseq  ;;  %v1813_v20 = vmov 1.0|1.0   ;;  %s2307_s27 = sld [smem:[#allocation7_spill]]  ;;  %vm293_vm10 = vcmask 261120  }
  0x32   :  { %vm257_vm9 = vsmask.f32 7424  ;;  %s2308_s2 = sld [smem:[#allocation9_spill]]  ;;  %vm514_vm11 = vcmask 523264   ;;  %vm659_vm12 = vcmask 1046528   ;;  %s1814_s0 = smov 32  }
  0x33   :  { %v91_v17 = vand.u32 127, %v90_v15  ;;  %s2309_s1 = sld [smem:[#allocation8_spill]]  ;;  %vm824_vm13 = vcmask 1040384   ;;  %vm1108_vm14 = vcmask 130048   ;;  %vm1344_vm15 = vcmask 1043456  }
  0x34   :  { %s2310_s28 = sld [smem:[#allocation11_spill]] }
  0x35   :  { %s2312_s7 = sld [smem:[#allocation10_spill]] }
  0x36   :  { %s2313_s10 = sld [smem:[#allocation12_spill]] }
  0x37   :  { %v1754_v23 = vld [vmem:[%s2307_s27 + $0x18] sm:$0xff]   ;;  %v1755_v24 = vld [vmem:[%s2307_s27 + $0x10] sm:$0xff]   ;;  %v1756_v43 = vld [vmem:[%s2307_s27 + $0x8] sm:$0xff]   ;;  %s2314_s9 = sld [smem:[#allocation15_spill]] }
  0x38   :  { %1603 = vmatpush3.bf16.msra.mxu1 %v1754_v23  ;;  %v1757_v48 = vld [vmem:[%s2307_s27] sm:$0xff]   ;;  %v1759_v56 = vld [vmem:[%s2308_s2 + $0x18] sm:$0xff]   ;;  %v1760_v57 = vld [vmem:[%s2308_s2 + $0x10] sm:$0xff]  }
  0x39   :  { %1604 = vmatprep.subr.bf16.mxu1 %v1811_v6  ;;  %v1758_v58 = vld [vmem:[%s2308_s2 + $0x38] sm:$0xff]   ;;  %v1762_v59 = vld [vmem:[%s2308_s2 + $0x8] sm:$0xff]   ;;  %v1761_v60 = vld [vmem:[%s2308_s2 + $0x30] sm:$0xff]  }
  0x3a   :  { %1634 = vmatprep.subr.bf16.mxu0 %v1758_v58  ;;  %v1764_v61 = vld [vmem:[%s2308_s2] sm:$0xff]   ;;  %v1763_v62 = vld [vmem:[%s2308_s2 + $0x28] sm:$0xff]   ;;  %v2070_v0 = vld [vmem:[%s2308_s2 + $0x58] sm:$0xff]  }
  0x3b   :  { %v1765_v63 = vld [vmem:[%s2308_s2 + $0x20] sm:$0xff]  }
  0x3c   :  { %1605 = vmatpush3.bf16.msra.mxu1 %v1755_v24  ;;  %v1437_v15 = vld [vmem:[%s2309_s1] ss:$0 sm:$0xff]  ;;  %s2311_s1 = sld [smem:[#allocation13_spill]] }
  0x3d   :  { %1618 = vmatprep.subr.bf16.mxu1 %v1811_v6 }
  0x8e   :  { %v94_v16 = vpop.permute.xlu0 %93  ;;  %v100_v18 = vpop.permute.xlu1 %99 }
  0x8f   :  { %vm107_vm1 = vcmp.eq.s32.totalorder %v94_v16, %v91_v17  ;;  %vm109_vm4 = vcmp.eq.s32.totalorder %v100_v18, %v91_v17 }
  0x92   :  { %v97_v19 = vpop.permute.xlu0 %96  ;;  %v103_v21 = vpop.permute.xlu1 %102 }
  0x93   :  { %vm108_vm2 = vcmp.eq.s32.totalorder %v97_v19, %v91_v17  ;;  %vm110_vm5 = vcmp.eq.s32.totalorder %v103_v21, %v91_v17 }
  0x94   :  { %vm1417_vm3 = vmpackc.low %vm108_vm2, %vm107_vm1  ;;  %vm1388_vm1 = vcmask 58368  }
  0x95   :  { %1591 = vmatmul.mubr.msk.bf16.vlgmr.msra.gmra.mxu0 %vm1417_vm3, %v1813_v20  ;;  %vm1419_vm6 = vmpackc.low %vm110_vm5, %vm109_vm4 }
  0x96   :  { %1594 = vmatprep.mubr.msk.bf16.mxu0 %vm1812_vm0, %v1811_v6  ;;  %v106_v22 = vpop.permute.xlu0 %105  ;;  %1635 = vmatpush3.bf16.msra.mxu0 %v1758_v58 }
  0x97   :  { %vm111_vm7 = vcmp.eq.s32.totalorder %v106_v22, %v91_v17  ;;  %1636 = vmatprep.subr.bf16.mxu0 %v1761_v60  ;;  %v763_v22 = vld [vmem:[%s2310_s28] sm:$0xff] }
  0x98   :  { %vm1421_vm8 = vmpackc.low %vm111_vm7, %vm111_vm7 }
  0x9a   :  { %1637 = vmatpush3.bf16.msra.mxu0 %v1761_v60 }
  0x9b   :  { %1638 = vmatprep.subr.bf16.mxu0 %v1763_v62 }
  0x9d   :  { %1595 = vmatmul.mubr.msk.bf16.gmra.mxu0 %vm1419_vm6, %v1813_v20 }
  0x9e   :  { %1598 = vmatprep.mubr.msk.bf16.mxu0 %vm1812_vm0, %v1811_v6  ;;  %1639 = vmatpush3.bf16.msra.mxu0 %v1763_v62 }
  0x9f   :  { %1640 = vmatprep.subr.bf16.mxu0 %v1765_v63 }
  0xa2   :  { %1641 = vmatpush3.bf16.msra.mxu0 %v1765_v63 }
  0xa3   :  { %1658 = vmatprep.subr.bf16.mxu0 %v2070_v0 }
  0xa5   :  { %1599 = vmatmul.mubr.msk.bf16.gmra.mxu0 %vm1421_vm8, %v1813_v20 }
 0x155   :  { %v223_v25 = vpop.f32.mrf.mxu0 }
 0x157   :  { %v1592_v26 = vpop.f32.mrf.mxu0 }
 0x159   :  { %v226_v27 = vpop.f32.mrf.mxu0 }
 0x15a   :  { %v249_v28 = vpack.c.bf16 %v226_v27, %v223_v25  ;;  %v764_v25 = vld [vmem:[%s2310_s28 + $0x8] sm:$0xff] }
 0x15b   :  { %v1593_v29 = vpop.f32.mrf.mxu0 }
 0x15c   :  { %v261_v31 = vshll.u32 %v249_v28, 16  ;;  %v259_v37 = vshrl.u32 %v249_v28, 16 }
 0x15d   :  { %v231_v30 = vpop.f32.mrf.mxu0 }
 0x15e   :  { %v263_v34 = vrot.slane %v261_v31, 1 }
 0x15f   :  { %v1596_v32 = vpop.f32.mrf.mxu0 }
 0x160   :  { %v264_v40 = vor.u32 %v263_v34, %v259_v37 }
 0x161   :  { %v234_v33 = vpop.f32.mrf.mxu0 }
 0x162   :  { %v250_v35 = vpack.c.bf16 %v234_v33, %v231_v30 }
 0x163   :  { %v1597_v36 = vpop.f32.mrf.mxu0 }
 0x164   :  { %v266_v38 = vshll.u32 %v250_v35, 16  ;;  %v270_v50 = vshrl.u32 %v250_v35, 16 }
 0x165   :  { %v239_v39 = vpop.f32.mrf.mxu0 }
 0x166   :  { %v268_v41 = vrot.slane %v266_v38, 1  ;;  %v251_v42 = vpack.c.bf16 %v239_v39, %v239_v39 }
 0x167   :  { %v1600_v44 = vpop.f32.mrf.mxu0 }
 0x168   :  { %v274_v45 = vshll.u32 %v251_v42, 16  ;;  %v269_v46 = vsel %vm257_vm9, %v264_v40, %v268_v41  ;;  %v272_v52 = vor.u32 %v270_v50, %v268_v41  ;;  %v278_v54 = vshrl.u32 %v251_v42, 16 }
 0x169   :  { %v242_v47 = vpop.f32.mrf.mxu0  ;;  %1607 = vmatmul.mubr.msk.bf16.vlgmr.msra.gmra.mxu1 %vm293_vm10, %v269_v46 }
 0x16a   :  { %1619 = vmatpush3.bf16.msra.mxu1 %v1756_v43  ;;  %1610 = vmatprep.mubr.msk.bf16.mxu1 %vm1812_vm0, %v1811_v6  ;;  %v276_v51 = vrot.slane %v274_v45, 1 }
 0x16b   :  { %v1601_v49 = vpop.f32.mrf.mxu0  ;;  %1620 = vmatprep.subr.bf16.mxu1 %v1811_v6 }
 0x16c   :  { %v277_v53 = vsel %vm257_vm9, %v272_v52, %v276_v51  ;;  %v280_v55 = vor.u32 %v278_v54, %v276_v51 }
 0x16e   :  { %1621 = vmatpush3.bf16.msra.mxu1 %v1757_v48 }
 0x16f   :  { %1646 = vmatprep.subr.bf16.mxu1 %v1759_v56 }
 0x171   :  { %1611 = vmatmul.mubr.msk.bf16.gmra.mxu1 %vm293_vm10, %v277_v53 }
 0x172   :  { %1614 = vmatprep.mubr.msk.bf16.mxu1 %vm1812_vm0, %v1811_v6 }
 0x179   :  { %1615 = vmatmul.mubr.msk.bf16.gmra.mxu1 %vm293_vm10, %v280_v55 }
 0x17a   :  { %1622 = vmatprep.mubr.msk.bf16.mxu1 %vm1812_vm0, %v1811_v6 }
 0x181   :  { %1623 = vmatmul.mubr.msk.bf16.vlgmr.msra.gmra.mxu1 %vm293_vm10, %v249_v28 }
 0x182   :  { %1626 = vmatprep.mubr.msk.bf16.mxu1 %vm1812_vm0, %v1811_v6  ;;  %1647 = vmatpush3.bf16.msra.mxu1 %v1759_v56 }
 0x183   :  { %1648 = vmatprep.subr.bf16.mxu1 %v1760_v57 }
 0x186   :  { %1649 = vmatpush3.bf16.msra.mxu1 %v1760_v57 }
 0x187   :  { %1650 = vmatprep.subr.bf16.mxu1 %v1762_v59 }
 0x189   :  { %1627 = vmatmul.mubr.msk.bf16.gmra.mxu1 %vm293_vm10, %v250_v35 }
 0x18a   :  { %1630 = vmatprep.mubr.msk.bf16.mxu1 %vm1812_vm0, %v1811_v6  ;;  %1651 = vmatpush3.bf16.msra.mxu1 %v1762_v59 }
 0x18b   :  { %1652 = vmatprep.subr.bf16.mxu1 %v1764_v61 }
 0x18e   :  { %1653 = vmatpush3.bf16.msra.mxu1 %v1764_v61 }
 0x18f   :  { %1670 = vmatprep.subr.bf16.mxu1 %v1811_v6 }
 0x191   :  { %1631 = vmatmul.mubr.msk.bf16.gmra.mxu1 %vm293_vm10, %v251_v42 }
 0x229   :  { %v337_v1 = vpop.f32.mrf.mxu1 }
 0x22b   :  { %v1608_v2 = vpop.f32.mrf.mxu1 }
 0x22d   :  { %v340_v3 = vpop.f32.mrf.mxu1 }
 0x22f   :  { %v1609_v4 = vpop.f32.mrf.mxu1 }
 0x231   :  { %v345_v5 = vpop.f32.mrf.mxu1 }
 0x233   :  { %v1612_v7 = vpop.f32.mrf.mxu1 }
 0x235   :  { %v348_v8 = vpop.f32.mrf.mxu1 }
 0x237   :  { %v1613_v9 = vpop.f32.mrf.mxu1 }
 0x239   :  { %v353_v10 = vpop.f32.mrf.mxu1 }
 0x23b   :  { %v1616_v11 = vpop.f32.mrf.mxu1 }
 0x23c   :  { %v1768_v11 = vld [vmem:[%s2308_s2 + $0x48] sm:$0xff]  }
 0x23d   :  { %v356_v12 = vpop.f32.mrf.mxu1 }
 0x23e   :  { %v1769_v12 = vld [vmem:[%s2308_s2 + $0x40] sm:$0xff]  }
 0x23f   :  { %v1617_v13 = vpop.f32.mrf.mxu1 }
 0x241   :  { %v411_v14 = vpop.f32.mrf.mxu1 }
 0x242   :  { %v412_v16 = vadd.f32 %v411_v14, %v337_v1  ;;  %v1770_v14 = vld [vmem:[%s2311_s1 + $0x18] sm:$0xff]  }
 0x243   :  { %v1624_v17 = vpop.f32.mrf.mxu1 }
 0x244   :  { %v440_v18 = vadd.f32 %v1437_v15, %v412_v16  ;;  %v1771_v16 = vld [vmem:[%s2311_s1 + $0x10] sm:$0xff]   ;;  %v1773_v17 = vld [vmem:[%s2311_s1 + $0x8] sm:$0xff]  }
 0x245   :  { %v414_v19 = vpop.f32.mrf.mxu1 }
 0x246   :  { %v445_v20 = vmax.f32 %v440_v18, 0.0  ;;  %v415_v21 = vadd.f32 %v414_v19, %v340_v3 }
 0x247   :  { %v1625_v23 = vpop.f32.mrf.mxu1 }
 0x248   :  { %v441_v24 = vadd.f32 %v1437_v15, %v415_v21  ;;  %v767_v27 = vadd.f32 %v763_v22, %v445_v20 }
 0x249   :  { %v419_v26 = vpop.f32.mrf.mxu1 }
 0x24a   :  { %v446_v28 = vmax.f32 %v441_v24, 0.0  ;;  %v420_v29 = vadd.f32 %v419_v26, %v345_v5  ;;  %v769_v35 = vsel %vm514_vm11, %v767_v27, -inf  ;;  %v1472_v27 = vld [vmem:[%s2312_s7] ss:$0 sm:$0xff] }
 0x24b   :  { %v1628_v30 = vpop.f32.mrf.mxu1 }
 0x24c   :  { %v458_v31 = vpack.c.bf16 %v446_v28, %v445_v20  ;;  %v768_v32 = vadd.f32 %v764_v25, %v446_v28  ;;  %v442_v33 = vadd.f32 %v1437_v15, %v420_v29 }
 0x24d   :  { %v422_v34 = vpop.f32.mrf.mxu1 }
 0x24e   :  { %v770_v36 = vsel %vm514_vm11, %v768_v32, -inf  ;;  %v447_v37 = vmax.f32 %v442_v33, 0.0  ;;  %v423_v38 = vadd.f32 %v422_v34, %v348_v8  ;;  %1654 = vmatprep.mubr.msk.bf16.mxu1 %vm514_vm11, %v458_v31  ;;  %v473_v42 = vshll.u32 %v458_v31, 16  ;;  %v1767_v8 = vld [vmem:[%s2308_s2 + $0x50] sm:$0xff]  }
 0x24f   :  { %v2085_v39 = vmax.f32 %v769_v35, %v770_v36  ;;  %v1629_v40 = vpop.f32.mrf.mxu1  ;;  %v471_v53 = vshrl.u32 %v458_v31, 16  ;;  %v660_v7 = vrot.slane %v458_v31, 1 }
 0x250   :  { %v443_v41 = vadd.f32 %v1437_v15, %v423_v38  ;;  %v794_v44 = vadd.f32 %v763_v22, %v447_v37  ;;  %v475_v51 = vrot.slane %v473_v42, 1 }
 0x251   :  { %v427_v43 = vpop.f32.mrf.mxu1 }
 0x252   :  { %v448_v45 = vmax.f32 %v443_v41, 0.0  ;;  %v428_v46 = vadd.f32 %v427_v43, %v353_v10  ;;  %v796_v54 = vsel %vm514_vm11, %v794_v44, -inf  ;;  %v476_v61 = vor.u32 %v475_v51, %v471_v53  ;;  %v765_v41 = vld [vmem:[%s2313_s10] sm:$0xff] }
 0x253   :  { %v1632_v47 = vpop.f32.mrf.mxu1 }
 0x254   :  { %v459_v48 = vpack.c.bf16 %v448_v45, %v447_v37  ;;  %v795_v49 = vadd.f32 %v764_v25, %v448_v45  ;;  %v444_v50 = vadd.f32 %v1437_v15, %v428_v46  ;;  %v1772_v15 = vld [vmem:[%s2272_s12 + $0x18] sm:$0xff]   ;;  %v766_v46 = vld [vmem:[%s2313_s10 + $0x8] sm:$0xff] }
 0x255   :  { %v430_v52 = vpop.f32.mrf.mxu1 }
 0x256   :  { %v797_v55 = vsel %vm514_vm11, %v795_v49, -inf  ;;  %v449_v56 = vmax.f32 %v444_v50, 0.0  ;;  %1655 = vmatmul.mubr.msk.bf16.vlgmr.msra.gmra.mxu1 %vm514_vm11, %v459_v48  ;;  %v478_v57 = vshll.u32 %v459_v48, 16  ;;  %v482_v2 = vshrl.u32 %v459_v48, 16 }
 0x257   :  { %v2090_v58 = vmax.f32 %v796_v54, %v797_v55  ;;  %v1633_v59 = vpop.f32.mrf.mxu1  ;;  %1678 = vmatprep.mubr.msk.bf16.mxu1 %vm1812_vm0, %v1811_v6  ;;  %v661_v3 = vrot.slane %v459_v48, 1  ;;  %1671 = vmatpush3.bf16.msra.mxu1 %v1770_v14 }
 0x258   :  { %v469_v60 = vpack.c.bf16 %v449_v56, %v449_v56  ;;  %v480_v62 = vrot.slane %v478_v57, 1  ;;  %1672 = vmatprep.subr.bf16.mxu1 %v1811_v6  ;;  %v1774_v57 = vld [vmem:[%s2272_s12 + $0x10] sm:$0xff]  }
 0x259   :  { %v662_v10 = vsel %vm659_vm12, %v660_v7, %v661_v3  ;;  %v799_v14 = vrot.slane %v2090_v58, 4 }
 0x25a   :  { %v486_v63 = vshll.u32 %v469_v60, 16  ;;  %v481_v1 = vsel %vm257_vm9, %v476_v61, %v480_v62  ;;  %v484_v5 = vor.u32 %v482_v2, %v480_v62  ;;  %v663_v13 = vrot.slane %v469_v60, 1 }
 0x25b   :  { %1642 = vmatprep.mubr.msk.bf16.mxu0 %vm514_vm11, %v481_v1  ;;  %1673 = vmatpush3.bf16.msra.mxu1 %v1771_v16  ;;  %v800_v16 = vmax.f32 %v2090_v58, %v799_v14 }
 0x25c   :  { %v488_v4 = vrot.slane %v486_v63, 1  ;;  %1674 = vmatprep.subr.bf16.mxu1 %v1811_v6  ;;  %v1775_v63 = vld [vmem:[%s2311_s1] sm:$0xff]  }
 0x25e   :  { %v489_v9 = vsel %vm257_vm9, %v484_v5, %v488_v4 }
 0x25f   :  { %1643 = vmatmul.mubr.msk.bf16.vlgmr.msra.gmra.mxu0 %vm514_vm11, %v489_v9  ;;  %1675 = vmatpush3.bf16.msra.mxu1 %v1773_v17  ;;  %v1777_v9 = vld [vmem:[%s2272_s12] sm:$0xff]  }
 0x260   :  { %1659 = vmatpush3.bf16.msra.mxu0 %v2070_v0  ;;  %1666 = vmatprep.mubr.msk.bf16.mxu0 %vm514_vm11, %v662_v10  ;;  %v664_v0 = vsel %vm659_vm12, %v661_v3, %v663_v13  ;;  %v1776_v3 = vld [vmem:[%s2272_s12 + $0x8] sm:$0xff]  }
 0x261   :  { %1660 = vmatprep.subr.bf16.mxu0 %v1767_v8  ;;  %1676 = vmatprep.subr.bf16.mxu1 %v1811_v6 }
 0x263   :  { %1677 = vmatpush3.bf16.msra.mxu1 %v1775_v63 }
 0x264   :  { %1661 = vmatpush3.bf16.msra.mxu0 %v1767_v8  ;;  %1694 = vmatprep.subr.bf16.mxu1 %v1811_v6 }
 0x265   :  { %1662 = vmatprep.subr.bf16.mxu0 %v1768_v11 }
 0x268   :  { %1663 = vmatpush3.bf16.msra.mxu0 %v1768_v11 }
 0x269   :  { %1664 = vmatprep.subr.bf16.mxu0 %v1769_v12 }
 0x26c   :  { %1665 = vmatpush3.bf16.msra.mxu0 %v1769_v12 }
 0x26d   :  { %1682 = vmatprep.subr.bf16.mxu0 %v1811_v6 }
 0x26f   :  { %1667 = vmatmul.mubr.msk.bf16.vlgmr.msra.gmra.mxu0 %vm514_vm11, %v664_v0 }
 0x270   :  { %1690 = vmatprep.mubr.msk.bf16.mxu0 %vm1812_vm0, %v1811_v6  ;;  %1683 = vmatpush3.bf16.msra.mxu0 %v1772_v15  ;;  %v772_v15 = vrot.slane %v2085_v39, 4 }
 0x271   :  { %1684 = vmatprep.subr.bf16.mxu0 %v1811_v6 }
 0x272   :  { %v773_v17 = vmax.f32 %v2085_v39, %v772_v15 }
 0x274   :  { %1685 = vmatpush3.bf16.msra.mxu0 %v1774_v57 }
 0x275   :  { %1686 = vmatprep.subr.bf16.mxu0 %v1811_v6 }
 0x278   :  { %1687 = vmatpush3.bf16.msra.mxu0 %v1776_v3 }
 0x279   :  { %1688 = vmatprep.subr.bf16.mxu0 %v1811_v6 }
 0x27c   :  { %1689 = vmatpush3.bf16.msra.mxu0 %v1777_v9 }
 0x27d   :  { %1706 = vmatprep.subr.bf16.mxu0 %v1811_v6 }
 0x316   :  { %v1656_v20 = vpop.f32.mrf.mxu1 }
 0x318   :  { %v632_v22 = vpop.f32.mrf.mxu1 }
 0x31a   :  { %v1657_v25 = vpop.f32.mrf.mxu1 }
 0x31c   :  { %v635_v34 = vpop.f32.mrf.mxu1 }
 0x31f   :  { %v1644_v18 = vpop.f32.mrf.mxu0 }
 0x320   :  { %v641_v24 = vadd.f32 %v1656_v20, %v1644_v18  ;;  %v801_v18 = vrot.slane %v800_v16, 2 }
 0x321   :  { %v555_v19 = vpop.f32.mrf.mxu0 }
 0x322   :  { %v633_v28 = vadd.f32 %v632_v22, %v555_v19  ;;  %v774_v19 = vrot.slane %v773_v17, 2  ;;  %v802_v20 = vmax.f32 %v800_v16, %v801_v18  ;;  %v1786_v18 = vld [vmem:[%s2282_s22 + $0x8] sm:$0xff]  }
 0x323   :  { %v1645_v21 = vpop.f32.mrf.mxu0 }
 0x324   :  { %v644_v31 = vadd.f32 %v1657_v25, %v1645_v21  ;;  %v775_v21 = vmax.f32 %v773_v17, %v774_v19  ;;  %v803_v22 = vrot.slane %v802_v20, 1  ;;  %v1785_v17 = vld [vmem:[%s2280_s20] sm:$0xff]  }
 0x325   :  { %v558_v23 = vpop.f32.mrf.mxu0  ;;  %v1495_v19 = vld [vmem:[%s2279_s19] ss:$0 sm:$0xff] }
 0x326   :  { %v636_v36 = vadd.f32 %v635_v34, %v558_v23  ;;  %v776_v23 = vrot.slane %v775_v21, 1 }
 0x32f   :  { %v1668_v26 = vpop.f32.mrf.mxu0 }
 0x330   :  { %v746_v29 = vadd.f32 %v1668_v26, %v641_v24  ;;  %v804_v24 = vmax.f32 %v802_v20, %v803_v22 }
 0x331   :  { %v729_v30 = vpop.f32.mrf.mxu0 }
 0x332   :  { %v757_v32 = vadd.f32 %v1472_v27, %v746_v29  ;;  %v744_v33 = vadd.f32 %v729_v30, %v633_v28  ;;  %v1479_v29 = vld [vmem:[%s2314_s9] ss:$0 sm:$0xff]  ;;  %s1816_s9 = smov 112  }
 0x333   :  { %v1669_v35 = vpop.f32.mrf.mxu0  ;;  %v1480_v30 = vld [vmem:[%s2271_s11] ss:$0 sm:$0xff] }
 0x334   :  { %v761_v37 = vmax.f32 %v757_v32, 0.0  ;;  %v755_v38 = vadd.f32 %v1472_v27, %v744_v33  ;;  %v747_v40 = vadd.f32 %v1669_v35, %v644_v31  ;;  %v1778_v32 = vld [vmem:[%s2274_s14 + $0x18] sm:$0xff]  }
 0x335   :  { %v732_v42 = vpop.f32.mrf.mxu0 }
 0x336   :  { %v759_v43 = vmax.f32 %v755_v38, 0.0  ;;  %v758_v44 = vadd.f32 %v1472_v27, %v747_v40  ;;  %v745_v45 = vadd.f32 %v732_v42, %v636_v36  ;;  %v805_v47 = vadd.f32 %v765_v41, %v761_v37  ;;  %v1779_v38 = vld [vmem:[%s2274_s14 + $0x10] sm:$0xff]   ;;  %v1780_v40 = vld [vmem:[%s2274_s14 + $0x8] sm:$0xff]  }
 0x338   :  { %v762_v48 = vmax.f32 %v758_v44, 0.0  ;;  %v756_v49 = vadd.f32 %v1472_v27, %v745_v45  ;;  %v778_v50 = vadd.f32 %v765_v41, %v759_v43  ;;  %v807_v53 = vsel %vm293_vm10, %v805_v47, -inf  ;;  %v1781_v41 = vld [vmem:[%s2274_s14] sm:$0xff]  }
 0x339   :  { %v777_v27 = vmax.f32 %v775_v21, %v776_v23  ;;  %v1481_v45 = vld [vmem:[%s2273_s13] ss:$0 sm:$0xff]  ;;  %s1815_s13 = smov 96  }
 0x33a   :  { %v806_v51 = vadd.f32 %v766_v46, %v762_v48  ;;  %v760_v52 = vmax.f32 %v756_v49, 0.0  ;;  %v780_v59 = vsel %vm293_vm10, %v778_v50, -inf }
 0x33c   :  { %v808_v54 = vsel %vm293_vm10, %v806_v51, -inf  ;;  %v779_v55 = vadd.f32 %v766_v46, %v760_v52 }
 0x33d   :  { %v809_v56 = vmax.f32 %v807_v53, %v808_v54 }
 0x33e   :  { %v781_v60 = vsel %vm293_vm10, %v779_v55, -inf  ;;  %v1487_v55 = vld [vmem:[%s2275_s15] ss:$0 sm:$0xff] }
 0x33f   :  { %v782_v61 = vmax.f32 %v780_v59, %v781_v60  ;;  %v810_v62 = vrot.slane %v809_v56, 4 }
 0x341   :  { %v811_v1 = vmax.f32 %v809_v56, %v810_v62  ;;  %v783_v2 = vrot.slane %v782_v61, 4 }
 0x343   :  { %v812_v4 = vrot.slane %v811_v1, 2  ;;  %v784_v5 = vmax.f32 %v782_v61, %v783_v2  ;;  %v1783_v2 = vld [vmem:[%s2278_s18] sm:$0xff]  }
 0x345   :  { %v813_v7 = vmax.f32 %v811_v1, %v812_v4  ;;  %v785_v8 = vrot.slane %v784_v5, 2  ;;  %v1782_v1 = vld [vmem:[%s2278_s18 + $0x8] sm:$0xff]  }
 0x347   :  { %v814_v10 = vrot.slane %v813_v7, 1  ;;  %v786_v11 = vmax.f32 %v784_v5, %v785_v8  ;;  %v1784_v5 = vld [vmem:[%s2280_s20 + $0x8] sm:$0xff]  }
 0x349   :  { %v815_v12 = vmax.f32 %v813_v7, %v814_v10  ;;  %v787_v13 = vrot.slane %v786_v11, 1  ;;  %v1493_v10 = vld [vmem:[%s2276_s16] ss:$0 sm:$0xff] }
 0x34b   :  { %817 = vrot.lane.b32.xlu1 %v815_v12, %s1814_s0  ;;  %v788_v0 = vmax.f32 %v786_v11, %v787_v13  ;;  %v1494_v12 = vld [vmem:[%s2277_s17] ss:$0 sm:$0xff] }
 0x34d   :  { %790 = vrot.lane.b32.xlu0 %v788_v0, %s1814_s0  ;;  %s2315_s0 = sld [smem:[#allocation14_spill]] }
 0x353   :  { %v1473_v54 = vld [vmem:[%s2315_s0] ss:$0 sm:$0xff] }
 0x3bd   :  { %v818_v25 = vpop.permute.xlu1 %817 }
 0x3be   :  { %v820_v26 = vsel %vm293_vm10, %v804_v24, %v818_v25 }
 0x3bf   :  { %v822_v28 = vrot.slane %v820_v26, 7  ;;  %v791_v58 = vpop.permute.xlu0 %790 }
 0x3c0   :  { %v793_v39 = vsel %vm293_vm10, %v777_v27, %v791_v58  ;;  %v1787_v27 = vld [vmem:[%s2282_s22] sm:$0xff]  }
 0x3c1   :  { %v825_v31 = vsel %vm824_vm13, %v793_v39, %v822_v28  ;;  %v1331_v28 = vld [vmem:[%s2284_s24] sm:$0xf] }
 0x3c2   :  { %v834_v33 = vpack.c.bf16 %v825_v31, %v825_v31  ;;  %v916_v34 = vmul.f32 %v1479_v29, %v825_v31  ;;  %v1346_v29 = vsel %vm1344_vm15, %v1331_v28, 0  ;;  %v1499_v58 = vld [vmem:[%s2281_s21] ss:$0 sm:$0xff] }
 0x3c4   :  { %v924_v35 = vadd.f32 %v1480_v30, %v916_v34  ;;  %1679 = vmatmul.mubr.msk.bf16.vlgmr.msra.gmra.mxu1 %vm514_vm11, %v834_v33 }
 0x3c5   :  { %1695 = vmatpush3.bf16.msra.mxu1 %v1778_v32  ;;  %1702 = vmatprep.mubr.msk.bf16.mxu1 %vm1812_vm0, %v1811_v6 }
 0x3c6   :  { %v925_v36 = vmax.f32 %v924_v35, 0.0  ;;  %1696 = vmatprep.subr.bf16.mxu1 %v1811_v6  ;;  %v1503_v35 = vld [vmem:[%s2283_s23] ss:$0 sm:$0xff] }
 0x3c8   :  { %v934_v37 = vpack.c.bf16 %v925_v36, %v925_v36 }
 0x3c9   :  { %1697 = vmatpush3.bf16.msra.mxu1 %v1779_v38 }
 0x3ca   :  { %1691 = vmatmul.mubr.msk.bf16.vlgmr.msra.gmra.mxu0 %vm514_vm11, %v934_v37  ;;  %1698 = vmatprep.subr.bf16.mxu1 %v1811_v6 }
 0x3cb   :  { %1710 = vmatprep.mubr.msk.bf16.mxu0 %vm1812_vm0, %v1811_v6  ;;  %1707 = vmatpush3.bf16.msra.mxu0 %v1782_v1 }
 0x3cc   :  { %1708 = vmatprep.subr.bf16.mxu0 %v1811_v6 }
 0x3cd   :  { %1699 = vmatpush3.bf16.msra.mxu1 %v1780_v40 }
 0x3ce   :  { %1700 = vmatprep.subr.bf16.mxu1 %v1811_v6 }
 0x3cf   :  { %1709 = vmatpush3.bf16.msra.mxu0 %v1783_v2 }
 0x3d0   :  { %1722 = vmatprep.subr.bf16.mxu0 %v1811_v6 }
 0x3d1   :  { %1701 = vmatpush3.bf16.msra.mxu1 %v1781_v41 }
 0x3d2   :  { %1714 = vmatprep.subr.bf16.mxu1 %v1811_v6 }
 0x484   :  { %v903_v42 = vpop.f32.mrf.mxu1 }
 0x485   :  { %v904_v57 = vadd.f32 %v1473_v54, %v903_v42 }
 0x486   :  { %v1680_v43 = vpop.f32.mrf.mxu1 }
 0x488   :  { %v906_v44 = vpop.f32.mrf.mxu1 }
 0x489   :  { %v1507_v44 = vld [vmem:[%s2285_s25] ss:$0 sm:$0xff] }
 0x48a   :  { %v1681_v46 = vpop.f32.mrf.mxu1  ;;  %v1003_v47 = vpop.f32.mrf.mxu0 }
 0x48b   :  { %v1004_v48 = vadd.f32 %v1481_v45, %v1003_v47 }
 0x48c   :  { %v1692_v49 = vpop.f32.mrf.mxu0 }
 0x48d   :  { %v1009_v50 = vmax.f32 %v1004_v48, 0.0 }
 0x48e   :  { %v1006_v51 = vpop.f32.mrf.mxu0 }
 0x48f   :  { %v1018_v52 = vpack.c.bf16 %v1009_v50, %v1009_v50 }
 0x490   :  { %v1693_v53 = vpop.f32.mrf.mxu0 }
 0x491   :  { %1703 = vmatmul.mubr.msk.bf16.vlgmr.msra.gmra.mxu1 %vm514_vm11, %v1018_v52 }
 0x492   :  { %1718 = vmatprep.mubr.msk.bf16.mxu1 %vm1812_vm0, %v1811_v6  ;;  %1715 = vmatpush3.bf16.msra.mxu1 %v1784_v5 }
 0x493   :  { %1716 = vmatprep.subr.bf16.mxu1 %v1811_v6 }
 0x496   :  { %1717 = vmatpush3.bf16.msra.mxu1 %v1785_v17 }
 0x497   :  { %1730 = vmatprep.subr.bf16.mxu1 %v1811_v6 }
 0x551   :  { %v1087_v56 = vpop.f32.mrf.mxu1 }
 0x552   :  { %v1088_v59 = vadd.f32 %v1487_v55, %v1087_v56 }
 0x553   :  { %v1704_v60 = vpop.f32.mrf.mxu1 }
 0x554   :  { %v1093_v61 = vadd.f32 %v1088_v59, %v904_v57 }
 0x555   :  { %v1090_v62 = vpop.f32.mrf.mxu1 }
 0x556   :  { %1099 = vrot.lane.b32.xlu0 %v1093_v61, %s1815_s13  ;;  %1095 = vrot.lane.b32.xlu1 %v1093_v61, %s1816_s9  ;;  %s1817_s13 = smov [#allocation2]  }
 0x557   :  { %v1705_v63 = vpop.f32.mrf.mxu1 }
 0x5c8   :  { %v1096_v3 = vpop.permute.xlu1 %1095  ;;  %v1100_v8 = vpop.permute.xlu0 %1099 }
 0x5c9   :  { %v1098_v4 = vmax.f32 %v1093_v61, %v1096_v3 }
 0x5cb   :  { %v1103_v7 = vmax.f32 %v1098_v4, 0.0  ;;  %v1102_v9 = vmax.f32 %v1098_v4, %v1100_v8 }
 0x5cd   :  { %1105 = vrot.lane.b32.xlu1 %v1103_v7, %s1816_s9  ;;  %s1396_s9 = sshll.u32 %s1817_s13, 4  ;;  %s1397_s9 = int_to_ptr.vmem [resolvable:$true] %s1396_s9 }
 0x5ce   :  { %s1788_s23 = scalar_lea.vmem %s1397_s9, 32  ;;  %p1793_p1 = scmp.lt.s32.totalorder %s1397_s9, %s1397_s9 }
 0x5cf   :  { %p1789_p0 = scmp.ne.s32.totalorder %s1397_s9, %s1788_s23  ;;  %p1794_p2 = scmp.lt.s32.totalorder %s1788_s23, %s1788_s23 }
 0x5d1   :  { %p1795_p3 = por %p1794_p2, %p1793_p1 }
 0x5d3   :  { %p1796_p4 = pnand %p1795_p3, %p1789_p0 }
 0x63f   :  { %v1106_v11 = vpop.permute.xlu1 %1105 }
 0x640   :  { %v1109_v13 = vsel %vm1108_vm14, %v1102_v9, %v1106_v11 }
 0x641   :  { %v1117_v0 = vmul.f32 %v1493_v10, %v1109_v13 }
 0x643   :  { %v1125_v14 = vadd.f32 %v1494_v12, %v1117_v0 }
 0x645   :  { %v1126_v15 = vmax.f32 %v1125_v14, 0.0 }
 0x647   :  { %v1131_v16 = vpack.c.bf16 %v1126_v15, %v1126_v15 }
 0x649   :  { %1711 = vmatmul.mubr.msk.bf16.vlgmr.msra.gmra.mxu0 %vm293_vm10, %v1131_v16 }
 0x64a   :  { %1726 = vmatprep.mubr.msk.bf16.mxu0 %vm1812_vm0, %v1811_v6  ;;  %1723 = vmatpush3.bf16.msra.mxu0 %v1786_v18 }
 0x64b   :  { %1724 = vmatprep.subr.bf16.mxu0 %v1811_v6 }
 0x64e   :  { %1725 = vmatpush3.bf16.msra.mxu0 %v1787_v27 }
 0x709   :  { %v1188_v20 = vpop.f32.mrf.mxu0 }
 0x70a   :  { %v1189_v21 = vadd.f32 %v1495_v19, %v1188_v20 }
 0x70b   :  { %v1712_v22 = vpop.f32.mrf.mxu0 }
 0x70c   :  { %v1194_v23 = vmax.f32 %v1189_v21, 0.0 }
 0x70d   :  { %v1191_v24 = vpop.f32.mrf.mxu0 }
 0x70e   :  { %v1199_v25 = vpack.c.bf16 %v1194_v23, %v1194_v23 }
 0x70f   :  { %v1713_v26 = vpop.f32.mrf.mxu0 }
 0x710   :  { %1719 = vmatmul.mubr.msk.bf16.vlgmr.msra.gmra.mxu1 %vm293_vm10, %v1199_v25 }
 0x711   :  { %1732 = vmatprep.mubr.msk.bf16.mxu1 %vm1812_vm0, %v1811_v6  ;;  %1731 = vmatpush3.bf16.msra.mxu1 %v1346_v29  ;;  %vm1340_vm0 = vcmask 64512  }
 0x7d0   :  { %v1256_v39 = vpop.f32.mrf.mxu1 }
 0x7d1   :  { %v1257_v30 = vadd.f32 %v1499_v58, %v1256_v39 }
 0x7d2   :  { %v1720_v31 = vpop.f32.mrf.mxu1 }
 0x7d3   :  { %v1262_v6 = vadd.f32 %v1257_v30, %v1109_v13 }
 0x7d4   :  { %v1259_v32 = vpop.f32.mrf.mxu1 }
 0x7d5   :  { %v1267_v33 = vpack.c.bf16 %v1262_v6, %v1262_v6 }
 0x7d6   :  { %v1721_v34 = vpop.f32.mrf.mxu1 }
 0x7d7   :  { %1727 = vmatmul.mubr.msk.bf16.vlgmr.msra.gmra.mxu0 %vm293_vm10, %v1267_v33 }
 0x897   :  { %v1324_v36 = vpop.f32.mrf.mxu0 }
 0x898   :  { %v1325_v37 = vadd.f32 %v1503_v35, %v1324_v36 }
 0x899   :  { %v1728_v38 = vpop.f32.mrf.mxu0 }
 0x89a   :  { %v1330_v40 = vmax.f32 %v1325_v37, 0.0 }
 0x89b   :  { %v1327_v41 = vpop.f32.mrf.mxu0 }
 0x89c   :  { %v1332_v42 = vpack.c.bf16 %v1330_v40, %v1330_v40 }
 0x89d   :  { %v1729_v43 = vpop.f32.mrf.mxu0 }
 0x89e   :  { %1733 = vmatmul.mubr.msk.bf16.vlgmr.msra.gmra.mxu1 %vm1340_vm0, %v1332_v42 }
 0x95e   :  { %v1382_v45 = vpop.f32.mrf.mxu1 }
 0x95f   :  { %v1383_v46 = vadd.f32 %v1507_v44, %v1382_v45 }
 0x960   :  { %v1734_v47 = vpop.f32.mrf.mxu1 }
 0x961   :  { %1389 = vst.msk [vmem:[#allocation2] sm:$0x3] %vm1388_vm1, %v1383_v46 }
 0x962   :  { %v1385_v48 = vpop.f32.mrf.mxu1 }
 0x963   :  { %1799 = shalt.err (!%p1796_p4)
}
 0x964   :  { %1399 = dma.vmem_to_hbm [thread:$0]  %s1397_s9, 32, %s2286_s26, [#allocation3]   ;;  %v1735_v49 = vpop.f32.mrf.mxu1 }
 0x965   :  { %1808 = dma.done.wait [#allocation3], 32  }
 0x966   :  { %1809 = vsyncadd [#allocation3], 4294967264 }
 0x967   :  { %1403 = vsyncpa [#allocation3], 1 }

</bundles_post_ra>
